<compile_context>
chip_gen: v6e
topology: v6e:2x2x1
jax: 0.10.0
libtpu: 0.0.40
codegen_flags: <defaults>
</compile_context>

<pallas_src>
import math
from functools import partial

import jax
import jax.numpy as jnp
from jax.experimental import pallas as pl
from jax.experimental.pallas import tpu as pltpu

_LANES = 128
_VMEM_LIMIT_BYTES = 48 * 1024 * 1024   # fits v5e/v6e (128 MiB) and v7x (64 MiB/TC)
_DEFAULT_BLOCK_ROWS = 4096             # 2 MiB/operand tile in f32


# ---------------------------------------------------------------------------
# Layout helpers: fold any shape to a lane-dense (rows, 128) 2D slab.
# ---------------------------------------------------------------------------
def _fold2d(x, lanes=_LANES):
    total = x.size
    rows = -(-total // lanes)
    pad = rows * lanes - total
    flat = x.reshape(-1)
    if pad:
        # TODO(synk): rare ragged-tail path (total % 128 != 0) still costs one
        # extra HBM pass; conv activations are virtually always 128-aligned.
        flat = jnp.pad(flat, (0, pad))
    return flat.reshape(rows, lanes)


def _unfold(y2, shape):
    total = math.prod(shape)
    if y2.size == total:
        return y2.reshape(shape)            # free reshape, no copy
    return y2.reshape(-1)[:total].reshape(shape)


def _choose_block_rows(rows, max_block_rows, min_grid=2):
    """Row-block size: multiple of 8 sublanes, and >= `min_grid` grid steps
    so both v7x TensorCores get work on medium-sized tensors."""
    if rows <= 8:
        return rows                          # block == full dim (legal for <8)
    target = -(-rows // min_grid)            # at least `min_grid` blocks
    br = min(max_block_rows, target)
    return -(-br // 8) * 8                   # round up; boundary blocks masked


# ---------------------------------------------------------------------------
# Kernel bodies (threshold / decay closed over as trace-time constants).
# ---------------------------------------------------------------------------
def _spike_from_mem(mem_f32, ge, thr, out_dtype):
    if thr >= 1e-3:
        # mem >= thr >= 1e-3  =>  mem + 1e-12 == mem in f32  =>  spike == 1.0
        return ge.astype(out_dtype)
    sp = jnp.where(ge, mem_f32, 0.0)
    return (sp * pl.reciprocal(mem_f32 + 1e-12, approx=False)).astype(out_dtype)


def _dglif_update(mem, thr, dec, spike_ref, newmem_ref):
    mem = mem.astype(jnp.float32)
    ge = mem >= thr
    spike_ref[...] = _spike_from_mem(mem, ge, thr, spike_ref.dtype)
    newmem_ref[...] = (jnp.where(ge, 0.0, mem) * dec).astype(newmem_ref.dtype)


def _make_step_kernel(threshold, decay, first_step):
    thr = float(threshold)
    dec = float(decay)

    if first_step:
        # No previous membrane: mem = inputs (skips streaming a zero array).
        def kernel(x_ref, spike_ref, newmem_ref):
            _dglif_update(x_ref[...], thr, dec, spike_ref, newmem_ref)
    else:
        def kernel(mem_ref, x_ref, spike_ref, newmem_ref):
            _dglif_update(mem_ref[...].astype(jnp.float32) + x_ref[...],
                          thr, dec, spike_ref, newmem_ref)
    return kernel


def _make_seq_kernel(threshold, decay):
    thr = float(threshold)
    dec = float(decay)

    def kernel(x_ref, spike_ref, memout_ref, mem_sc):
        t = pl.program_id(1)

        @pl.when(t == 0)
        def _():
            mem_sc[...] = jnp.zeros_like(mem_sc)

        mem = mem_sc[...] + x_ref[0].astype(jnp.float32)
        ge = mem >= thr
        spike_ref[0] = _spike_from_mem(mem, ge, thr, spike_ref.dtype)
        new_mem = jnp.where(ge, 0.0, mem) * dec
        mem_sc[...] = new_mem                        # membrane stays in VMEM

        @pl.when(t == pl.num_programs(1) - 1)
        def _():
            memout_ref[...] = new_mem.astype(memout_ref.dtype)

    return kernel


def _cost_estimate(n_elems, itemsize, n_arrays, threshold):
    return pl.CostEstimate(
        flops=4 * n_elems,
        transcendentals=0 if float(threshold) >= 1e-3 else n_elems,
        bytes_accessed=n_arrays * n_elems * itemsize)


# ---------------------------------------------------------------------------
# Per-timestep entry points (membrane kept in folded (rows, 128) layout).
# ---------------------------------------------------------------------------
@partial(jax.jit, static_argnames=("threshold", "decay", "max_block_rows"))
def dglif_first_step(x, *, threshold, decay,
                     max_block_rows=_DEFAULT_BLOCK_ROWS):
    """First timestep (mem_prev == 0): mem = x.

    Returns (spike in x.shape, new membrane in folded (rows, 128) layout)."""
    shape = x.shape
    x2 = _fold2d(x)
    rows, lanes = x2.shape
    br = _choose_block_rows(rows, max_block_rows)
    tile = pl.BlockSpec((br, lanes), lambda i: (i, 0))
    esz = jnp.dtype(x.dtype).itemsize

    spike2, mem2 = pl.pallas_call(
        _make_step_kernel(threshold, decay, first_step=True),
        out_shape=(jax.ShapeDtypeStruct((rows, lanes), x.dtype),
                   jax.ShapeDtypeStruct((rows, lanes), x.dtype)),
        grid=(pl.cdiv(rows, br),),
        in_specs=[tile],
        out_specs=(tile, tile),
        compiler_params=pltpu.CompilerParams(
            dimension_semantics=("parallel",),
            vmem_limit_bytes=_VMEM_LIMIT_BYTES),
        cost_estimate=_cost_estimate(rows * lanes, esz, 3, threshold),
    )(x2)
    return _unfold(spike2, shape), mem2


@partial(jax.jit, static_argnames=("threshold", "decay", "max_block_rows"),
         donate_argnums=(1,))
def dglif_step(x, mem2_prev, *, threshold, decay,
               max_block_rows=_DEFAULT_BLOCK_ROWS):
    """One DGLIF step. `mem2_prev` is the FOLDED (rows, 128) membrane; it is
    donated and updated in place (input_output_aliases).

    Returns (spike in x.shape, new membrane in folded layout)."""
    shape = x.shape
    x2 = _fold2d(x)
    rows, lanes = x2.shape
    br = _choose_block_rows(rows, max_block_rows)
    tile = pl.BlockSpec((br, lanes), lambda i: (i, 0))
    esz = jnp.dtype(x.dtype).itemsize

    spike2, mem2 = pl.pallas_call(
        _make_step_kernel(threshold, decay, first_step=False),
        out_shape=(jax.ShapeDtypeStruct((rows, lanes), x.dtype),
                   jax.ShapeDtypeStruct((rows, lanes), x.dtype)),
        grid=(pl.cdiv(rows, br),),
        in_specs=[tile, tile],
        out_specs=(tile, tile),
        input_output_aliases={0: 1},   # new membrane overwrites old membrane
        compiler_params=pltpu.CompilerParams(
            dimension_semantics=("parallel",),
            vmem_limit_bytes=_VMEM_LIMIT_BYTES),
        cost_estimate=_cost_estimate(rows * lanes, esz, 4, threshold),
    )(mem2_prev, x2)
    return _unfold(spike2, shape), mem2


# ---------------------------------------------------------------------------
# Fused time-loop entry point: T timesteps in a single pallas_call,
# membrane kept resident in VMEM across the time axis.
# ---------------------------------------------------------------------------
@partial(jax.jit,
         static_argnames=("threshold", "decay", "max_block_rows", "spike_dtype"))
def dglif_sequence(xs, *, threshold, decay,
                   max_block_rows=_DEFAULT_BLOCK_ROWS, spike_dtype=None):
    """xs: (T, *shape).

    Returns (spikes (T, *shape) in `spike_dtype` (default xs.dtype),
             final membrane in folded (rows, 128) layout, dtype xs.dtype)."""
    T = xs.shape[0]
    shape = xs.shape[1:]
    total = math.prod(shape)
    rows = -(-total // _LANES)
    pad = rows * _LANES - total
    flat = xs.reshape(T, total)
    if pad:
        flat = jnp.pad(flat, ((0, 0), (0, pad)))   # rare ragged-tail path
    x3 = flat.reshape(T, rows, _LANES)
    sdt = xs.dtype if spike_dtype is None else jnp.dtype(spike_dtype)

    br = _choose_block_rows(rows, max_block_rows)
    x_spec = pl.BlockSpec((1, br, _LANES), lambda i, t: (t, i, 0))
    s_spec = pl.BlockSpec((1, br, _LANES), lambda i, t: (t, i, 0))
    m_spec = pl.BlockSpec((br, _LANES), lambda i, t: (i, 0))

    n = rows * _LANES
    esz = jnp.dtype(xs.dtype).itemsize
    ce = pl.CostEstimate(
        flops=4 * T * n,
        transcendentals=0 if float(threshold) >= 1e-3 else T * n,
        bytes_accessed=T * n * esz + T * n * jnp.dtype(sdt).itemsize + n * esz)

    spikes3, mem2 = pl.pallas_call(
        _make_seq_kernel(threshold, decay),
        out_shape=(jax.ShapeDtypeStruct((T, rows, _LANES), sdt),
                   jax.ShapeDtypeStruct((rows, _LANES), xs.dtype)),
        grid=(pl.cdiv(rows, br), T),
        in_specs=[x_spec],
        out_specs=(s_spec, m_spec),
        scratch_shapes=[pltpu.VMEM((br, _LANES), jnp.float32)],
        compiler_params=pltpu.CompilerParams(
            dimension_semantics=("parallel", "arbitrary"),
            vmem_limit_bytes=_VMEM_LIMIT_BYTES),
        cost_estimate=ce,
    )(x3)

    if pad:
        spikes = spikes3.reshape(T, rows * _LANES)[:, :total].reshape((T,) + shape)
    else:
        spikes = spikes3.reshape((T,) + shape)
    return spikes, mem2


# ---------------------------------------------------------------------------
# Module wrapper (matches the PyTorch DGLIFNode forward semantics).
# ---------------------------------------------------------------------------
class DGLIFNode:
    """JAX/Pallas port of the PyTorch DGLIFNode (inference semantics).

    The membrane state is kept on-device in a folded, lane-dense (rows, 128)
    layout between calls; `node.mem` is a property that unfolds it on demand.
    """

    def __init__(self, threshold=0.5, shape=None, decay=1.0):
        self.shape = shape
        self.threshold = float(threshold)   # fixed at construction -> baked in
        self.decay = float(decay)
        self._mem2 = None                   # folded (rows, 128) membrane
        self._data_shape = None
        self.spike = None

    def n_reset(self):
        self._mem2 = None
        self._data_shape = None
        self.spike = None

    @property
    def mem(self):
        if self._mem2 is None:
            return None
        return _unfold(self._mem2, self._data_shape)

    def forward(self, inputs):
        self._data_shape = inputs.shape
        if self._mem2 is None:
            spike, self._mem2 = dglif_first_step(
                inputs, threshold=self.threshold, decay=self.decay)
        else:
            spike, self._mem2 = dglif_step(
                inputs, self._mem2, threshold=self.threshold, decay=self.decay)
        self.spike = spike
        return spike

    __call__ = forward

    def forward_sequence(self, xs, spike_dtype=None):
        """Fused alternative: run all T timesteps in one kernel launch.
        Optionally emit spikes in a narrower dtype (e.g. 'bfloat16')."""
        self.n_reset()
        self._data_shape = xs.shape[1:]
        spikes, self._mem2 = dglif_sequence(
            xs, threshold=self.threshold, decay=self.decay,
            spike_dtype=spike_dtype)
        self.spike = spikes[-1]
        return spikes

    # Host-side reductions (not worth a kernel).
    def get_fire_rate(self):
        return float(jnp.sum(self.spike)) / float(self.spike.size)

    def get_mem_loss(self):
        # TODO(synk): data-dependent boolean masking is host-side only (no jit).
        s = jnp.ravel(self.spike)
        s = s[s > 0.0]
        return (s - 1.0) ** 2


# ---------------------------------------------------------------------------
# Pure-JAX reference + self-check.
# ---------------------------------------------------------------------------
def _reference_step(inputs, mem_prev, threshold, decay):
    mem = mem_prev + inputs
    spike = jnp.where(mem < threshold, 0.0, mem) / (mem + 1e-12)
    new_mem = jnp.where(mem >= threshold, 0.0, mem) * decay
    return spike, new_mem


if __name__ == "__main__":
    key = jax.random.PRNGKey(0)
    k1, k2 = jax.random.split(key)

    # Small NCHW inputs: batch=2, channels=4, spatial=16x16.
    x1 = jax.random.normal(k1, (2, 4, 16, 16), dtype=jnp.float32)
    x2 = jax.random.normal(k2, (2, 4, 16, 16), dtype=jnp.float32)

    node = DGLIFNode(threshold=0.5, shape=(2, 4, 16, 16), decay=1.0)

    # Two timesteps through the stateful per-step path.
    s1 = node(x1)
    s2 = node(x2)
    jax.block_until_ready(s2)

    # Pure-JAX reference.
    thr, dec = jnp.float32(0.5), jnp.float32(1.0)
    r1, m1 = _reference_step(x1, jnp.zeros_like(x1), thr, dec)
    r2, m2 = _reference_step(x2, m1, thr, dec)
    assert jnp.allclose(s1, r1, atol=1e-5, rtol=1e-5)
    assert jnp.allclose(s2, r2, atol=1e-5, rtol=1e-5)
    assert jnp.allclose(node.mem, m2, atol=1e-5, rtol=1e-5)

    # Fused time-loop kernel (membrane resident in VMEM across T).
    xs = jnp.stack([x1, x2], axis=0)
    spikes_seq, mem_seq2 = dglif_sequence(xs, threshold=0.5, decay=1.0)
    jax.block_until_ready(spikes_seq)
    assert jnp.allclose(spikes_seq[0], r1, atol=1e-5, rtol=1e-5)
    assert jnp.allclose(spikes_seq[1], r2, atol=1e-5, rtol=1e-5)
    assert jnp.allclose(_unfold(mem_seq2, x1.shape), m2, atol=1e-5, rtol=1e-5)

    # Optional narrow-spike output (halves spike write traffic); values are
    # exactly 0.0 / 1.0 for threshold >= 1e-3 so bf16 is lossless here.
    spikes_bf16, _ = dglif_sequence(xs, threshold=0.5, decay=1.0,
                                    spike_dtype="bfloat16")
    jax.block_until_ready(spikes_bf16)
    assert jnp.allclose(spikes_bf16.astype(jnp.float32),
                        jnp.stack([r1, r2]), atol=1e-2, rtol=1e-2)

    print("KERNEL_OK")
</pallas_src>

<mosaic_0001>
module attributes {stable_mosaic.version = 11 : i64} {
  func.func @kernel(%arg0: i32, %arg1: memref<8x128xf32, #tpu.memory_space<vmem>>, %arg2: memref<8x128xf32, #tpu.memory_space<vmem>>, %arg3: memref<8x128xf32, #tpu.memory_space<vmem>>) attributes {dimension_semantics = [#tpu.dimension_semantics<parallel>], iteration_bounds = array<i64: 2>, scalar_prefetch = 0 : i64, scratch_operands = 0 : i64, tpu.core_type = #tpu.core_type<tc>, window_params = [{transform_indices = @transform_0, window_bounds = array<i64: 8, 128>}, {transform_indices = @transform_1, window_bounds = array<i64: 8, 128>}, {transform_indices = @transform_2, window_bounds = array<i64: 8, 128>}]} {
    %c0 = arith.constant 0 : index
    %c0_0 = arith.constant 0 : index
    %0 = vector.load %arg1[%c0, %c0_0] : memref<8x128xf32, #tpu.memory_space<vmem>>, vector<8x128xf32>
    %cst = arith.constant 5.000000e-01 : f32
    %1 = vector.broadcast %cst : f32 to vector<8x128xf32>
    %2 = arith.cmpf oge, %0, %1 : vector<8x128xf32>
    %3 = arith.extui %2 : vector<8x128xi1> to vector<8x128xi32>
    %4 = arith.sitofp %3 : vector<8x128xi32> to vector<8x128xf32>
    %c0_1 = arith.constant 0 : index
    %c0_2 = arith.constant 0 : index
    %5 = vector.load %arg2[%c0_1, %c0_2] : memref<8x128xf32, #tpu.memory_space<vmem>>, vector<8x128xf32>
    tpu.vector_store %arg2[%c0_1, %c0_2], %4 {strides = array<i32>} : memref<8x128xf32, #tpu.memory_space<vmem>>, vector<8x128xf32>,
    %cst_3 = arith.constant 0.000000e+00 : f32
    %6 = vector.broadcast %cst_3 : f32 to vector<8x128xf32>
    %7 = arith.select %2, %6, %0 : vector<8x128xi1>, vector<8x128xf32>
    %cst_4 = arith.constant 1.000000e+00 : f32
    %8 = vector.broadcast %cst_4 : f32 to vector<8x128xf32>
    %9 = arith.mulf %7, %8 : vector<8x128xf32>
    %c0_5 = arith.constant 0 : index
    %c0_6 = arith.constant 0 : index
    %10 = vector.load %arg3[%c0_5, %c0_6] : memref<8x128xf32, #tpu.memory_space<vmem>>, vector<8x128xf32>
    tpu.vector_store %arg3[%c0_5, %c0_6], %9 {strides = array<i32>} : memref<8x128xf32, #tpu.memory_space<vmem>>, vector<8x128xf32>,
    return
  }
  func.func @transform_0(%arg0: i32) -> (i32, i32) {
    %c0_i32 = arith.constant 0 : i32
    %c0_i32_0 = arith.constant 0 : i32
    return %arg0, %c0_i32 : i32, i32
  }
  func.func @transform_1(%arg0: i32) -> (i32, i32) {
    %c0_i32 = arith.constant 0 : i32
    %c0_i32_0 = arith.constant 0 : i32
    return %arg0, %c0_i32 : i32, i32
  }
  func.func @transform_2(%arg0: i32) -> (i32, i32) {
    %c0_i32 = arith.constant 0 : i32
    %c0_i32_0 = arith.constant 0 : i32
    return %arg0, %c0_i32 : i32, i32
  }
}

</mosaic_0001>

<bundles_post_ra>
// kernel: dglif_first_step.1
= control target key start
LH: loop header
LB: loop body
LE: loop exit
PB: predicated region body
PF: predicated region fallthrough
CT: control target
= control target key end

     0   :  { %8 = vsyncpa [#allocation3], 0  ;;  %s494_s0 = inlined_call_operand.vmem [shape: f32[16,128], index: 0, kind: input, shape index: {}]   ;;  %s495_s1 = inlined_call_operand.vmem [shape: f32[16,128], index: 1, kind: output, shape index: {0}]   ;;  %s496_s2 = inlined_call_operand.hbm [shape: f32[16,128], index: 2, kind: output, shape index: {1}]  }
   0x1   :  { %10 = vsyncpa [#allocation3 + $0x1], 0  ;;  %s392_s9 = smov 0   ;;  %s394_s10 = smov 0  }
   0x2   :  { %s396_s11 = smov 0   ;;  %s398_s12 = smov 0  }
   0x3 LB: > { %s413_s13 = sadd.s32 4294967295, %s373_s12   ;;  %s261_s14 = sadd.s32 4294967294, %s373_s12   ;;  %s373_s12 = sphi %s398_s12, %s502_s12   ;;  %s369_s11 = sphi %s396_s11, %s501_s11   ;;  %s365_s10 = sphi %s394_s10, %s500_s10   ;;  %s361_s9 = sphi %s392_s9, %s499_s9  }
   0x4   : > { %s417_s15 = sadd.s32 1, %s373_s12   ;;  %s75_s16 = sadd.s32 1, %s369_s11 }
   0x5   : > { %s72_s17 = ssub.s32 %s373_s12, %s417_s15  ;;  %p85_p0 = scmp.ne.s32.totalorder %s369_s11, %s365_s10 }
   0x6   : > { %p73_p1 = scmp.eq.s32.totalorder %s72_s17, 0  ;;  %p86_p2 = scmp.eq.s32.totalorder %s413_s13, 1 }
   0x7   : > { %p91_p3 = scmp.ne.s32.totalorder %s365_s10, %s361_s9  ;;  %p92_p4 = scmp.eq.s32.totalorder %s261_s14, 1 }
   0x8   : > { %s428_s18 = scalar_select %p73_p1, %s369_s11, %s75_s16  }
   0x9   : > { %p430_p5 = por %p86_p2, %p85_p0  ;;  %p434_p6 = por %p92_p4, %p91_p3 }
   0xa   : > { %p264_p7 = scmp.ge.s32.totalorder %s373_s12, 1  ;;  %p117_p8 = scmp.lt.s32.totalorder %s373_s12, 3 }
   0xc   : > { %p118_p9 = pnand %p264_p7, %p117_p8 }
   0xd   : > { %s139_s21 = sand.u32 (!%p118_p9), 1, %s365_s10   ;;  %p142_p10 = scmp.lt.s32.totalorder (!%p118_p9), %s413_s13, 1 }
   0xe   : > { %121 = sbr.rel (%p118_p9) target bundleno = 42 (0x2a), region = 24  ;;  %s265_s22 = sshll.u32 (!%p118_p9), %s139_s21, 3 }
   0xf   : > { %s270_s24 = sshll.u32 (!%p118_p9), %s413_s13, 7  ;;  %s141_s26 = scalar_lea.vmem (!%p118_p9), [#allocation2], %s265_s22 }
  0x10   : > { %s178_s27 = sshll.u32 (!%p118_p9), %s141_s26, 4  ;;  %s455_s8 = scalar_lea.hbm (!%p118_p9), %s496_s2, %s270_s24  ;;  %s450_s27 = int_to_ptr.vmem [resolvable:$true] %s178_s27 }
  0x11   : > { %s313_s14 = scalar_lea.vmem (!%p118_p9), %s450_s27, 128  ;;  %s376_s16 = smov (!%p118_p9), [#allocation2]  }
  0x12   : > { %p314_p11 = scmp.ne.s32.totalorder (!%p118_p9), %s450_s27, %s313_s14  ;;  %s317_s17 = sshll.u32 (!%p118_p9), %s376_s16, 4  ;;  %s318_s17 = int_to_ptr.vmem [resolvable:$false] %s317_s17 }
  0x13   : > { %s143_s23 = scalar_select %p142_p10, %s413_s13, 1  ;;  %v375_v2 = vmov 0.0  }
  0x14   : > { %s162_s13 = scalar_lea.sflag [#allocation3], %s139_s21  ;;  %p315_p12 = pnand %p314_p11, %p430_p5 }
  0x15   : > { %s266_s25 = sshll.u32 %s143_s23, 3  ;;  %s319_s22 = scalar_lea.vmem %s318_s17, 256 }
  0x16   : > { %s145_s30 = scalar_lea.vmem %s494_s0, %s266_s25  ;;  %s149_s5 = scalar_lea.vmem %s495_s1, %s266_s25 }
  0x17   : > { %v150_v0 = vld [vmem:[%s145_s30] sm:$0xff]  ;;  %p316_p13 = pneg %p315_p12  ;;  %p320_p0 = scmp.lt.s32.totalorder %s450_s27, %s318_s17 }
  0x18   : > { %vm151_vm0 = vcmp.ge.f32.partialorder %v150_v0, 0.5  ;;  %p321_p1 = scmp.lt.s32.totalorder %s319_s22, %s313_s14 }
  0x19   : > { %v155_v1 = vsel %vm151_vm0, 0.0, %v150_v0  ;;  %v268_v3 = vsel %vm151_vm0, 1.0, %v375_v2 }
  0x1a   : > { %156 = vst [vmem:[%s141_s26] sm:$0xff] %v155_v1  ;;  %154 = vst [vmem:[%s149_s5] sm:$0xff] %v268_v3  ;;  %p322_p2 = por %p321_p1, %p320_p0 }
  0x1c   : > { %p323_p3 = pnand %p322_p2, %p316_p13 }
  0x1e   : > { %326 = shalt.err (!%p323_p3)
}
  0x1f   : > { %s327_s23 = scalar_lea.hbm %s455_s8, 128  ;;  %s331_s25 = scalar_lea.hbm %s496_s2, 256 }
  0x20   : > { %p328_p4 = scmp.ne.s32.totalorder %s455_s8, %s327_s23  ;;  %p332_p9 = scmp.lt.s32.totalorder %s455_s8, %s496_s2 }
  0x21   : > { %p333_p10 = scmp.lt.s32.totalorder %s331_s25, %s327_s23 }
  0x22   : > { %p329_p7 = pnand %p328_p4, %p430_p5 }
  0x23   : > { %p334_p11 = por %p333_p10, %p332_p9 }
  0x24   : > { %p330_p8 = pneg %p329_p7 }
  0x26   : > { %p335_p12 = pnand %p334_p11, %p330_p8 }
  0x28   : > { %338 = shalt.err (!%p335_p12)
}
  0x29   : > { %273 = dma.vmem_to_hbm [thread:$0]  (%p430_p5), %s450_s27, 128, %s455_s8, %s162_s13  }
  0x2a PF: > { %p279_p13 = scmp.ge.s32.totalorder %s373_s12, 2  ;;  %s197_s29 = sand.u32 1, %s361_s9  }
  0x2b   : > { %s198_s30 = scalar_lea.sflag [#allocation3], %s197_s29 }
  0x2c   : > { %p276_p0 = pnand %p279_p13, %p434_p6 }
  0x2e   : > { %p277_p1 = pneg %p276_p0 }
  0x30   : > { %356 = dma.done.wait (%p277_p1), %s198_s30, 128  }
  0x31   : > { %358 = vsyncadd (%p277_p1), %s198_s30, 4294967168  ;;  %p13_p2 = scmp.ge.s32.totalorder %s417_s15, 4   ;;  %s499_s9 = smov %s365_s10 }
  0x32   : > { %s500_s10 = smov %s369_s11  ;;  %s501_s11 = smov %s428_s18 }
  0x33   : > { %s502_s12 = smov %s417_s15  ;;  %15 = sbr.rel (!%p13_p2) target bundleno = 3 (0x3), region = 71 }
  0x38   :  { %203 = vsyncpa [#allocation3], 1 }
  0x39   :  { %205 = vsyncpa [#allocation3 + $0x1], 1 }

</bundles_post_ra>
